<compile_context>
chip_gen: v6e
topology: v6e:2x2x1
jax: 0.10.0
libtpu: 0.0.40
codegen_flags: <defaults>
</compile_context>

<pallas_src>
import functools

import jax
import jax.numpy as jnp
from jax.experimental import pallas as pl
from jax.experimental.pallas import tpu as pltpu


def _round_up(x, m):
    return ((x + m - 1) // m) * m


def _focal_loss_kernel(pred_ref, tgt_ref, mask_ref, out_ref, *, gamma, alpha):
    """One (block_b, C, block_l) slab -> accumulate a (1, block_b, 1) partial loss.

    Layout: classes on sublanes, sequence on lanes, so every vreg is lane-dense
    even for tiny C.
    """
    l = pl.program_id(2)

    @pl.when(l == 0)
    def _():
        out_ref[...] = jnp.zeros_like(out_ref)

    # f32 compute keeps lse / accumulation accurate on every generation.
    logits = pred_ref[...].astype(jnp.float32)                  # (BB, C, TL)
    C = logits.shape[1]

    # Numerically stable log_softmax pieces over the class (sublane) axis;
    # log_probs itself is never built.
    m = jnp.max(logits, axis=1, keepdims=True)                  # (BB, 1, TL)
    shifted = logits - m                                        # (BB, C, TL)
    lse = jnp.log(jnp.sum(jnp.exp(shifted), axis=1))            # (BB, TL)

    # torch.gather(log_prob, -1, target): one-hot select + sublane reduce.
    tgt = tgt_ref[...]                                          # (BB, TL) int32
    classes = jax.lax.broadcasted_iota(jnp.int32, (C, 1), 0)    # tiny constant
    sel = classes[None, :, :] == tgt[:, None, :]                # (BB, C, TL) bool
    gathered = jnp.sum(jnp.where(sel, shifted, 0.0), axis=1)    # (BB, TL)

    lp = (gathered - lse) * mask_ref[...].astype(jnp.float32)   # (BB, TL)
    prob = jnp.exp(lp)                                          # masked cols -> 1.0

    if alpha is not None:
        # Mirrors torch `alpha.gather(0, target)` with a 2-element alpha.
        # NOTE: like the PyTorch module this only makes sense for binary
        # targets (any class > 0 is weighted by alpha[1]).
        a0, a1 = alpha
        lp = lp * jnp.where(tgt == 0, jnp.float32(a0), jnp.float32(a1))

    q = 1.0 - prob
    if float(gamma).is_integer() and 0 <= int(gamma) <= 8:
        g = int(gamma)
        w = jnp.ones_like(q) if g == 0 else q
        for _ in range(g - 1):           # VPU multiplies; keeps the EUP free for exp
            w = w * q
    else:
        w = q ** jnp.float32(gamma)

    # (BB, 1) partial sum over this L tile -> (1, BB, 1) accumulator slot.
    out_ref[...] += jnp.sum(w * lp, axis=-1, keepdims=True)[None]


def _vmem_limit_bytes():
    default_cap = 128 * 1024 * 1024
    try:
        cap = int(getattr(pltpu.get_tpu_info(), "vmem_capacity_bytes", default_cap))
    except Exception:
        cap = default_cap
    # Leave headroom: ~96 MiB on v5e/v6e (128 MiB VMEM), ~48 MiB on v7x (64 MiB).
    return int(min(cap * 3 // 4, 100 * 1024 * 1024))


def _pick_block_l(L, block_b, C, itemsize, vmem_limit):
    """Largest lane-dense L tile whose temporaries + double-buffered input fit VMEM."""
    # Per slab element: 2*itemsize (double-buffered input DMA) plus ~28 B of live
    # f32 temporaries (f32 cast, shifted, exp, select, product) -- independent of
    # the input dtype, so bf16 inputs no longer oversize the tile.
    bytes_per_elem = 2 * itemsize + 28
    per_l = max(1, block_b * C)
    budget = max(2 * 1024 * 1024, vmem_limit * 3 // 4)
    bl_budget = budget // (per_l * bytes_per_elem)
    # An input tile of a few MiB already saturates HBM BW; bigger buys nothing.
    bl_tile = (4 * 1024 * 1024) // max(1, per_l * itemsize)
    bl = min(bl_budget, bl_tile)
    L8 = _round_up(L, 8)
    if bl >= L8:
        return L8                            # single full-L tile, minimal padding
    # TODO(synk): for vocab-scale C even block_l=128 may not fit VMEM; add a C
    # grid axis with online max/lse (flash-style) instead of a full-C slab.
    return max(128, (bl // 128) * 128)       # lane-dense multi-tile


def focal_loss(predict, target, mask, *, gamma=2, alpha=None,
               size_average=False, block_b=None, block_l=None,
               inputs_bcl=False):
    """Pallas TPU FocalLoss.forward (matches the PyTorch module exactly,
    including its sign: returns sum_L (1 - p)^gamma * log p, not the negation).

    predict: (L, B, C) float (f32 or bf16 -- bf16 halves the kernel's HBM read),
    target: (L, B) int, mask: (L, B) float.  Returns (B,) float32.

    Pass inputs_bcl=True with predict (B, C, L) and target/mask (B, L) to skip
    the wrapper transpose -- that transpose is a full extra HBM read+write of
    predict, so producers that can emit the (B, C, L) layout should.
    alpha (like the PyTorch module) is only meaningful for binary targets.
    """
    if alpha is None:
        alpha_t = None
    elif isinstance(alpha, (float, int)):
        alpha_t = (float(alpha), 1.0 - float(alpha))
    elif isinstance(alpha, (list, tuple)):
        if len(alpha) != 2:
            raise ValueError("expect alpha to be a list of 2 elements")
        alpha_t = (float(alpha[0]), float(alpha[1]))
    else:
        raise ValueError("expect alpha to be a float, int or list")

    if inputs_bcl:
        B, C, L = predict.shape
        L_orig = L
    else:
        L_orig = predict.shape[0]
        # Layout plumbing only: classes -> sublanes, sequence -> lanes.
        # TODO(synk): fuse this permute into the producer (or pass inputs_bcl=True).
        predict = jnp.transpose(predict, (1, 2, 0))              # (B, C, L)
        target = jnp.transpose(target, (1, 0))                   # (B, L)
        mask = jnp.transpose(mask, (1, 0))                       # (B, L)
        B, C, L = predict.shape

    target = target.astype(jnp.int32)

    if block_b is None:
        block_b = 8 if (B > 8 and B % 8 == 0) else B
    assert B % block_b == 0, "B must be divisible by block_b"
    n_bt = B // block_b

    vmem_limit = _vmem_limit_bytes()
    itemsize = jnp.dtype(predict.dtype).itemsize
    if block_l is None:
        block_l = _pick_block_l(L, block_b, C, itemsize, vmem_limit)

    L_pad = _round_up(L, block_l)
    n_lt = L_pad // block_l
    # v7x has two TensorCores: make sure the *parallel* part of the grid has at
    # least two programs.  If B gives only one tile, split L into two parallel
    # halves and reduce the two partial sums in the wrapper.
    l_splits = 2 if (n_bt == 1 and n_lt >= 2) else 1
    if n_lt % l_splits != 0:
        n_lt = _round_up(n_lt, l_splits)
        L_pad = n_lt * block_l
    lps = n_lt // l_splits                   # L tiles per parallel split

    if L_pad != L:
        pad = L_pad - L
        # Zero padding: mask==0 columns contribute exactly 0 to the loss.
        predict = jnp.pad(predict, ((0, 0), (0, 0), (0, pad)))
        target = jnp.pad(target, ((0, 0), (0, pad)))
        mask = jnp.pad(mask, ((0, 0), (0, pad)))

    kernel = functools.partial(_focal_loss_kernel, gamma=gamma, alpha=alpha_t)

    out = pl.pallas_call(
        kernel,
        out_shape=jax.ShapeDtypeStruct((l_splits, B, 1), jnp.float32),
        grid_spec=pltpu.PrefetchScalarGridSpec(
            num_scalar_prefetch=0,
            grid=(n_bt, l_splits, lps),
            in_specs=[
                pl.BlockSpec((block_b, C, block_l),
                             lambda b, s, l: (b, 0, s * lps + l)),   # predict
                pl.BlockSpec((block_b, block_l),
                             lambda b, s, l: (b, s * lps + l)),      # target
                pl.BlockSpec((block_b, block_l),
                             lambda b, s, l: (b, s * lps + l)),      # mask
            ],
            out_specs=pl.BlockSpec((1, block_b, 1),
                                   lambda b, s, l: (s, b, 0)),       # accumulator
        ),
        compiler_params=pltpu.CompilerParams(
            dimension_semantics=("parallel", "parallel", "arbitrary"),
            vmem_limit_bytes=vmem_limit),
    )(predict, target, mask)

    result = jnp.sum(out[:, :, 0], axis=0)                    # (B,)
    if size_average:
        result = result / jnp.float32(L_orig)                 # mean over length dim
    return result


def focal_loss_ref(predict, target, mask, gamma=2, alpha=None, size_average=False):
    """Pure-JAX reference matching the PyTorch module exactly. Inputs (L, B, C)."""
    lp_all = jax.nn.log_softmax(predict.astype(jnp.float32), axis=-1)
    lp = jnp.take_along_axis(lp_all, target[..., None], axis=-1)[..., 0]
    lp = lp * mask.astype(jnp.float32)
    prob = jnp.exp(lp)
    if alpha is not None:
        if isinstance(alpha, (float, int)):
            alpha = [float(alpha), 1.0 - float(alpha)]
        alpha_arr = jnp.asarray(alpha, jnp.float32)
        lp = lp * alpha_arr[target]
    loss = (1.0 - prob) ** gamma * lp
    return loss.mean(axis=0) if size_average else loss.sum(axis=0)


if __name__ == "__main__":
    key = jax.random.PRNGKey(0)
    k1, k2, k3, k4, k5, k6, k7, k8, k9 = jax.random.split(key, 9)

    # --- Test 1: module defaults (gamma=2, alpha=None, size_average=False). ---
    L, B, C = 16, 4, 16
    predict = jax.random.normal(k1, (L, B, C), dtype=jnp.float32)
    target = jax.random.randint(k2, (L, B), 0, C, dtype=jnp.int32)
    mask = (jax.random.uniform(k3, (L, B)) > 0.3).astype(jnp.float32)

    out = focal_loss(predict, target, mask, gamma=2, alpha=None, size_average=False)
    out = jax.block_until_ready(out)
    ref = focal_loss_ref(predict, target, mask, gamma=2, alpha=None, size_average=False)
    assert out.shape == (B,)
    assert jnp.allclose(out, ref, atol=1e-5, rtol=1e-5), (out, ref)

    # --- Test 2: ragged L (padding path), bf16 input, binary targets + alpha,
    #             size_average=True. ---
    L2, B2, C2 = 100, 8, 32
    predict2 = jax.random.normal(k4, (L2, B2, C2), dtype=jnp.float32).astype(jnp.bfloat16)
    target2 = jax.random.randint(k5, (L2, B2), 0, 2, dtype=jnp.int32)
    mask2 = (jax.random.uniform(k6, (L2, B2)) > 0.2).astype(jnp.float32)

    out2 = focal_loss(predict2, target2, mask2, gamma=2, alpha=0.25, size_average=True)
    out2 = jax.block_until_ready(out2)
    ref2 = focal_loss_ref(predict2, target2, mask2, gamma=2, alpha=0.25, size_average=True)
    assert out2.shape == (B2,)
    assert jnp.allclose(out2, ref2, atol=1e-3, rtol=1e-3), (out2, ref2)

    # --- Test 3: multi-tile L with the 2-way parallel L split (v7x path),
    #             L not a multiple of the tile (padding), integer gamma=3. ---
    L3, B3, C3 = 600, 4, 16
    predict3 = jax.random.normal(k7, (L3, B3, C3), dtype=jnp.float32)
    target3 = jax.random.randint(k8, (L3, B3), 0, C3, dtype=jnp.int32)
    mask3 = (jax.random.uniform(k9, (L3, B3)) > 0.5).astype(jnp.float32)

    out3 = focal_loss(predict3, target3, mask3, gamma=3, alpha=None,
                      size_average=False, block_l=128)
    out3 = jax.block_until_ready(out3)
    ref3 = focal_loss_ref(predict3, target3, mask3, gamma=3, alpha=None,
                          size_average=False)
    assert out3.shape == (B3,)
    assert jnp.allclose(out3, ref3, atol=1e-4, rtol=1e-4), (out3, ref3)

    print("KERNEL_OK")
</pallas_src>

<mosaic_0001>
module attributes {stable_mosaic.version = 11 : i64} {
  func.func @_focal_loss_kernel(%arg0: i32, %arg1: i32, %arg2: i32, %arg3: memref<4x16x16xf32, #tpu.memory_space<vmem>>, %arg4: memref<4x16xi32, #tpu.memory_space<vmem>>, %arg5: memref<4x16xf32, #tpu.memory_space<vmem>>, %arg6: memref<1x4x1xf32, #tpu.memory_space<vmem>>) attributes {dimension_semantics = [#tpu.dimension_semantics<parallel>, #tpu.dimension_semantics<parallel>, #tpu.dimension_semantics<arbitrary>], iteration_bounds = array<i64: 1, 1, 1>, scalar_prefetch = 0 : i64, scratch_operands = 0 : i64, tpu.core_type = #tpu.core_type<tc>, window_params = [{transform_indices = @transform_0, window_bounds = array<i64: 4, 16, 16>}, {transform_indices = @transform_1, window_bounds = array<i64: 4, 16>}, {transform_indices = @transform_2, window_bounds = array<i64: 4, 16>}, {transform_indices = @transform_3, window_bounds = array<i64: 1, 4, 1>}]} {
    %c0_i32 = arith.constant 0 : i32
    %0 = arith.cmpi eq, %arg2, %c0_i32 : i32
    %1 = arith.extui %0 : i1 to i32
    %c0_i32_0 = arith.constant 0 : i32
    %2 = arith.cmpi ne, %1, %c0_i32_0 : i32
    scf.if %2 {
      %cst_18 = arith.constant 0.000000e+00 : f32
      %35 = vector.broadcast %cst_18 : f32 to vector<1x4x1xf32>
      %c0_19 = arith.constant 0 : index
      %c0_20 = arith.constant 0 : index
      %c0_21 = arith.constant 0 : index
      %36 = vector.load %arg6[%c0_19, %c0_20, %c0_21] : memref<1x4x1xf32, #tpu.memory_space<vmem>>, vector<1x4x1xf32>
      tpu.vector_store %arg6[%c0_19, %c0_20, %c0_21], %35 {strides = array<i32>} : memref<1x4x1xf32, #tpu.memory_space<vmem>>, vector<1x4x1xf32>,
    } else {
    }
    %c0 = arith.constant 0 : index
    %c0_1 = arith.constant 0 : index
    %c0_2 = arith.constant 0 : index
    %3 = vector.load %arg3[%c0, %c0_1, %c0_2] : memref<4x16x16xf32, #tpu.memory_space<vmem>>, vector<4x16x16xf32>
    %cst = arith.constant dense<0xFF800000> : vector<4x16xf32>
    %4 = vector.multi_reduction <maximumf>, %3, %cst [1] : vector<4x16x16xf32> to vector<4x16xf32>
    %5 = vector.shape_cast %4 : vector<4x16xf32> to vector<4x1x16xf32>
    %6 = vector.broadcast %5 : vector<4x1x16xf32> to vector<4x16x16xf32>
    %7 = arith.subf %3, %6 : vector<4x16x16xf32>
    %8 = math.exp %7 : vector<4x16x16xf32>
    %cst_3 = arith.constant dense<0.000000e+00> : vector<4x16xf32>
    %9 = vector.multi_reduction <add>, %8, %cst_3 [1] : vector<4x16x16xf32> to vector<4x16xf32>
    %10 = math.log %9 : vector<4x16xf32>
    %c0_4 = arith.constant 0 : index
    %c0_5 = arith.constant 0 : index
    %11 = vector.load %arg4[%c0_4, %c0_5] : memref<4x16xi32, #tpu.memory_space<vmem>>, vector<4x16xi32>
    %12 = tpu.iota {dimensions = array<i32: 0>} : vector<16x1xi32>
    %13 = vector.shape_cast %12 : vector<16x1xi32> to vector<1x16x1xi32>
    %14 = vector.shape_cast %11 : vector<4x16xi32> to vector<4x1x16xi32>
    %15 = vector.broadcast %13 : vector<1x16x1xi32> to vector<4x16x16xi32>
    %16 = vector.broadcast %14 : vector<4x1x16xi32> to vector<4x16x16xi32>
    %17 = arith.cmpi eq, %15, %16 : vector<4x16x16xi32>
    %cst_6 = arith.constant 0.000000e+00 : f32
    %18 = vector.broadcast %cst_6 : f32 to vector<4x16x16xf32>
    %19 = arith.select %17, %7, %18 : vector<4x16x16xi1>, vector<4x16x16xf32>
    %cst_7 = arith.constant dense<0.000000e+00> : vector<4x16xf32>
    %20 = vector.multi_reduction <add>, %19, %cst_7 [1] : vector<4x16x16xf32> to vector<4x16xf32>
    %21 = arith.subf %20, %10 : vector<4x16xf32>
    %c0_8 = arith.constant 0 : index
    %c0_9 = arith.constant 0 : index
    %22 = vector.load %arg5[%c0_8, %c0_9] : memref<4x16xf32, #tpu.memory_space<vmem>>, vector<4x16xf32>
    %23 = arith.mulf %21, %22 : vector<4x16xf32>
    %24 = math.exp %23 : vector<4x16xf32>
    %cst_10 = arith.constant 1.000000e+00 : f32
    %25 = vector.broadcast %cst_10 : f32 to vector<4x16xf32>
    %26 = arith.subf %25, %24 : vector<4x16xf32>
    %27 = arith.mulf %26, %26 : vector<4x16xf32>
    %c0_11 = arith.constant 0 : index
    %c0_12 = arith.constant 0 : index
    %c0_13 = arith.constant 0 : index
    %28 = vector.load %arg6[%c0_11, %c0_12, %c0_13] : memref<1x4x1xf32, #tpu.memory_space<vmem>>, vector<1x4x1xf32>
    %29 = arith.mulf %27, %23 : vector<4x16xf32>
    %cst_14 = arith.constant dense<0.000000e+00> : vector<4xf32>
    %30 = vector.multi_reduction <add>, %29, %cst_14 [1] : vector<4x16xf32> to vector<4xf32>
    %31 = vector.shape_cast %30 : vector<4xf32> to vector<4x1xf32>
    %32 = vector.shape_cast %31 : vector<4x1xf32> to vector<1x4x1xf32>
    %33 = arith.addf %28, %32 : vector<1x4x1xf32>
    %c0_15 = arith.constant 0 : index
    %c0_16 = arith.constant 0 : index
    %c0_17 = arith.constant 0 : index
    %34 = vector.load %arg6[%c0_15, %c0_16, %c0_17] : memref<1x4x1xf32, #tpu.memory_space<vmem>>, vector<1x4x1xf32>
    tpu.vector_store %arg6[%c0_15, %c0_16, %c0_17], %33 {strides = array<i32>} : memref<1x4x1xf32, #tpu.memory_space<vmem>>, vector<1x4x1xf32>,
    return
  }
  func.func @transform_0(%arg0: i32, %arg1: i32, %arg2: i32) -> (i32, i32, i32) {
    %c1_i32 = arith.constant 1 : i32
    %0 = arith.muli %arg1, %c1_i32 : i32
    %1 = arith.addi %0, %arg2 : i32
    %c0_i32 = arith.constant 0 : i32
    %c0_i32_0 = arith.constant 0 : i32
    return %arg0, %c0_i32, %1 : i32, i32, i32
  }
  func.func @transform_1(%arg0: i32, %arg1: i32, %arg2: i32) -> (i32, i32) {
    %c1_i32 = arith.constant 1 : i32
    %0 = arith.muli %arg1, %c1_i32 : i32
    %1 = arith.addi %0, %arg2 : i32
    %c0_i32 = arith.constant 0 : i32
    return %arg0, %1 : i32, i32
  }
  func.func @transform_2(%arg0: i32, %arg1: i32, %arg2: i32) -> (i32, i32) {
    %c1_i32 = arith.constant 1 : i32
    %0 = arith.muli %arg1, %c1_i32 : i32
    %1 = arith.addi %0, %arg2 : i32
    %c0_i32 = arith.constant 0 : i32
    return %arg0, %1 : i32, i32
  }
  func.func @transform_3(%arg0: i32, %arg1: i32, %arg2: i32) -> (i32, i32, i32) {
    %c0_i32 = arith.constant 0 : i32
    %c0_i32_0 = arith.constant 0 : i32
    return %arg1, %arg0, %c0_i32 : i32, i32, i32
  }
}

</mosaic_0001>

<bundles_post_ra>
// kernel: tpu_custom_call.1
= control target key start
LH: loop header
LB: loop body
LE: loop exit
PB: predicated region body
PF: predicated region fallthrough
CT: control target
= control target key end

     0   :  { %8 = vsyncpa [#allocation3], 0  ;;  %s527_s0 = inlined_call_operand.hbm [shape: f32[4,16,16], index: 0, kind: input, shape index: {}]   ;;  %s528_s1 = inlined_call_operand.hbm [shape: s32[4,16], index: 1, kind: input, shape index: {}]   ;;  %s529_s2 = inlined_call_operand.hbm [shape: f32[4,16], index: 2, kind: input, shape index: {}]   ;;  %s530_s3 = inlined_call_operand.vmem [shape: f32[1,4,1], index: 3, kind: output, shape index: {}]  }
   0x1   :  { %9 = vsyncpa [#allocation5], 0  ;;  %s447_s12 = smov [#allocation4]   ;;  %s448_s14 = smov [#allocation2]  }
   0x2   :  { %s34_s13 = sshll.u32 %s447_s12, 4  ;;  %s18_s15 = sshll.u32 %s448_s14, 4  ;;  %s35_s13 = int_to_ptr.vmem [resolvable:$true] %s34_s13  ;;  %s19_s15 = int_to_ptr.vmem [resolvable:$true] %s18_s15 }
   0x3   :  { %s391_s16 = scalar_lea.vmem %s35_s13, 64  ;;  %p396_p1 = scmp.lt.s32.totalorder %s35_s13, %s35_s13 }
   0x4   :  { %p392_p0 = scmp.ne.s32.totalorder %s35_s13, %s391_s16  ;;  %p397_p2 = scmp.lt.s32.totalorder %s391_s16, %s391_s16 }
   0x6   :  { %p398_p3 = por %p397_p2, %p396_p1 }
   0x8   :  { %p399_p4 = pnand %p398_p3, %p392_p0 }
   0xa   :  { %402 = shalt.err (!%p399_p4)
}
   0xb   :  { %37 = dma.hbm_to_vmem [thread:$0]  %s528_s1, 64, %s35_s13, [#allocation5]  }
   0xc   :  { %s411_s19 = scalar_lea.vmem %s19_s15, 1024  ;;  %p416_p6 = scmp.lt.s32.totalorder %s19_s15, %s19_s15 }
   0xd   :  { %p412_p5 = scmp.ne.s32.totalorder %s19_s15, %s411_s19  ;;  %p417_p7 = scmp.lt.s32.totalorder %s411_s19, %s411_s19 }
   0xf   :  { %p418_p8 = por %p417_p7, %p416_p6 }
  0x11   :  { %p419_p9 = pnand %p418_p8, %p412_p5 }
  0x13   :  { %422 = shalt.err (!%p419_p9)
}
  0x14   :  { %s449_s20 = smov 128   ;;  %s450_s21 = smov 8  }
  0x15   :  { %24 = dma.hbm_to_vmem [thread:$0]  %s527_s0, 1024, %s19_s15, [#allocation3], %s449_s20, %s449_s20, %s450_s21  }
  0x16   :  { %s451_s24 = smov [#allocation6]  }
  0x17   :  { %s47_s25 = sshll.u32 %s451_s24, 4  ;;  %s48_s25 = int_to_ptr.vmem [resolvable:$true] %s47_s25 }
  0x18   :  { %s431_s26 = scalar_lea.vmem %s48_s25, 64  ;;  %p436_p11 = scmp.lt.s32.totalorder %s48_s25, %s48_s25 }
  0x19   :  { %p432_p10 = scmp.ne.s32.totalorder %s48_s25, %s431_s26  ;;  %p437_p12 = scmp.lt.s32.totalorder %s431_s26, %s431_s26 }
  0x1b   :  { %p438_p13 = por %p437_p12, %p436_p11 }
  0x1d   :  { %p439_p0 = pnand %p438_p13, %p432_p10 }
  0x1f   :  { %442 = shalt.err (!%p439_p0)
}
  0x20   :  { %50 = dma.hbm_to_vmem [thread:$0]  %s529_s2, 64, %s48_s25, [#allocation5]  }
  0x21   :  { %443 = dma.done.wait [#allocation3], 1024  }
  0x22   :  { %444 = vsyncadd [#allocation3], 4294966272 }
  0x23   :  { %445 = dma.done.wait [#allocation5], 128  }
  0x24   :  { %446 = vsyncadd [#allocation5], 4294967168  ;;  %vm67_vm0 = vcmask 3072   ;;  %v452_v0 = vmov 0.0   ;;  %vm77_vm1 = vcmask 130048   ;;  %v69_v1 = vld [vmem:[#allocation2] sm:$0xff]  ;;  %v183_v28 = vlaneseq }
  0x25   :  { %68 = vst.msk [vmem:[%s530_s3] sm:$0xf] %vm67_vm0, %v452_v0  ;;  %v70_v2 = vld [vmem:[#allocation2 + $0x8] sm:$0xff]  ;;  %v71_v3 = vld [vmem:[#allocation2 + $0x10] sm:$0xff]  ;;  %v72_v4 = vld [vmem:[#allocation2 + $0x18] sm:$0xff]  ;;  %v78_v7 = vsel %vm77_vm1, %v69_v1, -inf }
  0x26   :  { %v73_v5 = vld [vmem:[#allocation2 + $0x20] sm:$0xff]  ;;  %v74_v6 = vld [vmem:[#allocation2 + $0x28] sm:$0xff]  ;;  %v79_v8 = vsel %vm77_vm1, %v70_v2, -inf  ;;  %v87_v9 = vsel %vm77_vm1, %v71_v3, -inf  ;;  %v75_v10 = vld [vmem:[#allocation2 + $0x30] sm:$0xff]  ;;  %v88_v13 = vsel %vm77_vm1, %v72_v4, -inf }
  0x27   :  { %v76_v11 = vld [vmem:[#allocation2 + $0x38] sm:$0xff]  ;;  %v80_v12 = vmax.f32 %v78_v7, %v79_v8  ;;  %v96_v14 = vsel %vm77_vm1, %v73_v5, -inf  ;;  %v97_v15 = vsel %vm77_vm1, %v74_v6, -inf  ;;  %v89_v16 = vmax.f32 %v87_v9, %v88_v13 }
  0x28   :  { %v98_v17 = vmax.f32 %v96_v14, %v97_v15  ;;  %v105_v18 = vsel %vm77_vm1, %v75_v10, -inf  ;;  %v106_v19 = vsel %vm77_vm1, %v76_v11, -inf  ;;  %v453_v29 = vmov 1966171168  }
  0x29   :  { %v81_v20 = vrot.slane %v80_v12, 4  ;;  %v107_v21 = vmax.f32 %v105_v18, %v106_v19  ;;  %v90_v22 = vrot.slane %v89_v16, 4  ;;  %v195_v30 = vunpack.c.l.s4 %v453_v29  ;;  %v343_v45 = vld.sshfl [vmem:[#allocation4] sm:$0x33 pattern:$0x75316420] }
  0x2a   :  { %v99_v23 = vrot.slane %v98_v17, 4  ;;  %v495_v39 = vshrl.u32 %v183_v28, 7  ;;  %v193_v54 = vcombine.high %v343_v45, %v343_v45  ;;  %vm321_vm10 = vcmask 1041409  }
  0x2b   :  { %v82_v24 = vmax.f32 %v80_v12, %v81_v20  ;;  %v108_v25 = vrot.slane %v107_v21, 4  ;;  %v91_v26 = vmax.f32 %v89_v16, %v90_v22  ;;  %v196_v40 = vunpack.c.0.s8 %v195_v30 }
  0x2c   :  { %v100_v27 = vmax.f32 %v98_v17, %v99_v23  ;;  %vm324_vm11 = vcmask 1042434   ;;  %vm327_vm12 = vcmask 1043459   ;;  %vm330_vm13 = vcmask 125952  }
  0x2d   :  { %v83_v31 = vrot.slane %v82_v24, 2  ;;  %v109_v32 = vmax.f32 %v107_v21, %v108_v25  ;;  %v92_v33 = vrot.slane %v91_v26, 2  ;;  %v199_v50 = vsub.s32 %v196_v40, %v495_v39 }
  0x2e   :  { %v101_v34 = vrot.slane %v100_v27, 2 }
  0x2f   :  { %v84_v35 = vmax.f32 %v82_v24, %v83_v31  ;;  %v110_v36 = vrot.slane %v109_v32, 2  ;;  %v93_v37 = vmax.f32 %v91_v26, %v92_v33  ;;  %v200_v7 = vrot.slane %v343_v45, %v199_v50 }
  0x30   :  { %v102_v38 = vmax.f32 %v100_v27, %v101_v34  ;;  %v207_v9 = vrot.slane %v193_v54, %v199_v50 }
  0x31   :  { %v85_v41 = vrot.slane %v84_v35, 1  ;;  %v111_v42 = vmax.f32 %v109_v32, %v110_v36  ;;  %v94_v43 = vrot.slane %v93_v37, 1 }
  0x32   :  { %v103_v44 = vrot.slane %v102_v38, 1 }
  0x33   :  { %v86_v46 = vmax.f32 %v84_v35, %v85_v41  ;;  %v112_v47 = vrot.slane %v111_v42, 1  ;;  %v95_v48 = vmax.f32 %v93_v37, %v94_v43 }
  0x34   :  { %v104_v49 = vmax.f32 %v102_v38, %v103_v44 }
  0x35   :  { %v113_v51 = vmax.f32 %v111_v42, %v112_v47  ;;  %v114_v52 = vsub.f32 %v69_v1, %v86_v46  ;;  %v115_v53 = vsub.f32 %v70_v2, %v86_v46  ;;  %v116_v55 = vsub.f32 %v71_v3, %v95_v48 }
  0x36   :  { %v117_v56 = vsub.f32 %v72_v4, %v95_v48  ;;  %v118_v57 = vsub.f32 %v73_v5, %v104_v49  ;;  %v119_v58 = vsub.f32 %v74_v6, %v104_v49  ;;  %v212_v2 = vsub.s32 0, %v495_v39 }
  0x37   :  { %v120_v59 = vsub.f32 %v75_v10, %v113_v51  ;;  %v122_v60 = vmul.f32 1.442695, %v114_v52  ;;  %v124_v61 = vmul.f32 1.442695, %v115_v53  ;;  %v121_v62 = vsub.f32 %v76_v11, %v113_v51 }
  0x38   :  { %v126_v63 = vmul.f32 1.442695, %v116_v55  ;;  %v128_v0 = vmul.f32 1.442695, %v117_v56  ;;  %v130_v8 = vmul.f32 1.442695, %v118_v57  ;;  %v208_v4 = vcombine.high %v200_v7, %v200_v7 }
  0x39   :  { %351 = vpow2.f32 %v122_v60  ;;  %v132_v12 = vmul.f32 1.442695, %v119_v58  ;;  %v134_v1 = vmul.f32 1.442695, %v120_v59  ;;  %v136_v3 = vmul.f32 1.442695, %v121_v62 }
  0x3a   :  { %353 = vpow2.f32 %v124_v61  ;;  %v209_v5 = vcombine.high %v207_v9, %v207_v9  ;;  %v213_v6 = vrot.slane %v200_v7, %v212_v2  ;;  %v185_v10 = vadd.s32 8, %v495_v39 }
  0x3b   :  { %355 = vpow2.f32 %v126_v63  ;;  %v217_v11 = vrot.slane %v207_v9, %v212_v2  ;;  %v221_v13 = vrot.slane %v208_v4, %v212_v2 }
  0x3c   :  { %357 = vpow2.f32 %v128_v0  ;;  %v225_v14 = vrot.slane %v209_v5, %v212_v2  ;;  %vm226_vm2 = vcmp.eq.s32.totalorder %v495_v39, %v213_v6  ;;  %vm227_vm3 = vcmp.eq.s32.totalorder %v185_v10, %v213_v6 }
  0x3d   :  { %359 = vpow2.f32 %v130_v8  ;;  %vm228_vm4 = vcmp.eq.s32.totalorder %v495_v39, %v217_v11  ;;  %vm229_vm5 = vcmp.eq.s32.totalorder %v185_v10, %v217_v11  ;;  %vm230_vm6 = vcmp.eq.s32.totalorder %v495_v39, %v221_v13 }
  0x3e   :  { %361 = vpow2.f32 %v132_v12  ;;  %v234_v15 = vsel %vm226_vm2, %v114_v52, 0.0  ;;  %v235_v16 = vsel %vm227_vm3, %v115_v53, 0.0  ;;  %vm231_vm7 = vcmp.eq.s32.totalorder %v185_v10, %v221_v13 }
  0x3f   :  { %363 = vpow2.f32 %v134_v1  ;;  %vm232_vm8 = vcmp.eq.s32.totalorder %v495_v39, %v225_v14  ;;  %vm233_vm9 = vcmp.eq.s32.totalorder %v185_v10, %v225_v14  ;;  %v236_v18 = vsel %vm228_vm4, %v116_v55, 0.0 }
  0x40   :  { %365 = vpow2.f32 %v136_v3  ;;  %v237_v19 = vsel %vm229_vm5, %v117_v56, 0.0  ;;  %v238_v22 = vsel %vm230_vm6, %v118_v57, 0.0  ;;  %v242_v23 = vsel %vm77_vm1, %v234_v15, 0.0 }
  0x41   :  { %v243_v24 = vsel %vm77_vm1, %v235_v16, 0.0  ;;  %v239_v27 = vsel %vm231_vm7, %v119_v58, 0.0  ;;  %v240_v28 = vsel %vm232_vm8, %v120_v59, 0.0  ;;  %v241_v29 = vsel %vm233_vm9, %v121_v62, 0.0 }
  0x42   :  { %v251_v33 = vsel %vm77_vm1, %v236_v18, 0.0  ;;  %v252_v34 = vsel %vm77_vm1, %v237_v19, 0.0  ;;  %v244_v37 = vadd.f32 %v243_v24, %v242_v23  ;;  %v260_v38 = vsel %vm77_vm1, %v238_v22, 0.0 }
  0x43   :  { %v261_v43 = vsel %vm77_vm1, %v239_v27, 0.0  ;;  %v253_v46 = vadd.f32 %v252_v34, %v251_v33  ;;  %v269_v47 = vsel %vm77_vm1, %v240_v28, 0.0  ;;  %v270_v48 = vsel %vm77_vm1, %v241_v29, 0.0 }
  0x44   :  { %v245_v55 = vrot.slane %v244_v37, 4  ;;  %v262_v56 = vadd.f32 %v261_v43, %v260_v38  ;;  %v271_v62 = vadd.f32 %v270_v48, %v269_v47 }
  0x45   :  { %v254_v61 = vrot.slane %v253_v46, 4 }
  0x46   :  { %v352_v17 = vpop.eup %351  ;;  %v246_v9 = vadd.f32 %v245_v55, %v244_v37  ;;  %v263_v12 = vrot.slane %v262_v56, 4  ;;  %v272_v6 = vrot.slane %v271_v62, 4 }
  0x47   :  { %v354_v20 = vpop.eup %353  ;;  %v138_v21 = vsel %vm77_vm1, %v352_v17, 0.0  ;;  %v255_v5 = vadd.f32 %v254_v61, %v253_v46 }
  0x48   :  { %v356_v25 = vpop.eup %355  ;;  %v139_v26 = vsel %vm77_vm1, %v354_v20, 0.0  ;;  %v247_v15 = vrot.slane %v246_v9, 2  ;;  %v264_v16 = vadd.f32 %v263_v12, %v262_v56  ;;  %v273_v23 = vadd.f32 %v272_v6, %v271_v62 }
  0x49   :  { %v358_v30 = vpop.eup %357  ;;  %v140_v31 = vadd.f32 %v139_v26, %v138_v21  ;;  %v147_v32 = vsel %vm77_vm1, %v356_v25, 0.0  ;;  %v256_v20 = vrot.slane %v255_v5, 2 }
  0x4a   :  { %v360_v35 = vpop.eup %359  ;;  %v148_v36 = vsel %vm77_vm1, %v358_v30, 0.0  ;;  %v248_v25 = vadd.f32 %v247_v15, %v246_v9  ;;  %v265_v26 = vrot.slane %v264_v16, 2  ;;  %v274_v28 = vrot.slane %v273_v23, 2 }
  0x4b   :  { %v362_v39 = vpop.eup %361  ;;  %v141_v40 = vrot.slane %v140_v31, 4  ;;  %v149_v41 = vadd.f32 %v148_v36, %v147_v32  ;;  %v156_v42 = vsel %vm77_vm1, %v360_v35, 0.0  ;;  %v257_v27 = vadd.f32 %v256_v20, %v255_v5  ;;  %v282_v36 = vld [vmem:[#allocation6] sm:$0xf] }
  0x4c   :  { %v364_v44 = vpop.eup %363  ;;  %v157_v45 = vsel %vm77_vm1, %v362_v39, 0.0  ;;  %v249_v29 = vrot.slane %v248_v25, 1  ;;  %v266_v30 = vadd.f32 %v265_v26, %v264_v16  ;;  %v275_v32 = vadd.f32 %v274_v28, %v273_v23 }
  0x4d   :  { %v366_v49 = vpop.eup %365  ;;  %v142_v50 = vadd.f32 %v141_v40, %v140_v31  ;;  %v150_v51 = vrot.slane %v149_v41, 4  ;;  %v158_v52 = vadd.f32 %v157_v45, %v156_v42  ;;  %v165_v53 = vsel %vm77_vm1, %v364_v44, 0.0 }
  0x4e   :  { %v166_v54 = vsel %vm77_vm1, %v366_v49, 0.0  ;;  %v258_v31 = vrot.slane %v257_v27, 1  ;;  %v250_v33 = vadd.f32 %v249_v29, %v248_v25  ;;  %v267_v34 = vrot.slane %v266_v30, 1 }
  0x4f   :  { %v143_v57 = vrot.slane %v142_v50, 2  ;;  %v151_v58 = vadd.f32 %v150_v51, %v149_v41  ;;  %v159_v59 = vrot.slane %v158_v52, 4  ;;  %v167_v60 = vadd.f32 %v166_v54, %v165_v53 }
  0x50   :  { %v259_v38 = vadd.f32 %v258_v31, %v257_v27  ;;  %v276_v39 = vrot.slane %v275_v32, 1  ;;  %v268_v42 = vadd.f32 %v267_v34, %v266_v30  ;;  %v284_v44 = vrot.slane %v282_v36, 1 }
  0x51   :  { %v144_v63 = vadd.f32 %v143_v57, %v142_v50  ;;  %v152_v0 = vrot.slane %v151_v58, 2  ;;  %v160_v7 = vadd.f32 %v159_v59, %v158_v52  ;;  %v168_v8 = vrot.slane %v167_v60, 4 }
  0x52   :  { %v285_v46 = vrot.slane %v282_v36, 2  ;;  %v277_v48 = vadd.f32 %v276_v39, %v275_v32  ;;  %v286_v52 = vrot.slane %v282_v36, 3 }
  0x53   :  { %v145_v1 = vrot.slane %v144_v63, 1  ;;  %v153_v2 = vadd.f32 %v152_v0, %v151_v58  ;;  %v161_v3 = vrot.slane %v160_v7, 2  ;;  %v169_v4 = vadd.f32 %v168_v8, %v167_v60 }
  0x55   :  { %v146_v10 = vadd.f32 %v145_v1, %v144_v63  ;;  %v154_v11 = vrot.slane %v153_v2, 1  ;;  %v162_v13 = vadd.f32 %v161_v3, %v160_v7  ;;  %v170_v14 = vrot.slane %v169_v4, 2 }
  0x57   :  { %v155_v17 = vadd.f32 %v154_v11, %v153_v2  ;;  %v163_v18 = vrot.slane %v162_v13, 1  ;;  %v171_v19 = vadd.f32 %v170_v14, %v169_v4  ;;  %367 = vlog2.f32 %v146_v10 }
  0x59   :  { %v164_v21 = vadd.f32 %v163_v18, %v162_v13  ;;  %v172_v22 = vrot.slane %v171_v19, 1  ;;  %369 = vlog2.f32 %v155_v17 }
  0x5b   :  { %v173_v24 = vadd.f32 %v172_v22, %v171_v19  ;;  %371 = vlog2.f32 %v164_v21  ;;  %v311_v22 = vld [vmem:[%s530_s3] sm:$0xf] }
  0x5d   :  { %373 = vlog2.f32 %v173_v24 }
  0x64   :  { %v368_v35 = vpop.eup %367 }
  0x65   :  { %v175_v37 = vmul.f32 0.6931472, %v368_v35 }
  0x66   :  { %v370_v40 = vpop.eup %369 }
  0x67   :  { %v177_v41 = vmul.f32 0.6931472, %v370_v40  ;;  %v278_v43 = vsub.f32 %v250_v33, %v175_v37 }
  0x68   :  { %v372_v45 = vpop.eup %371 }
  0x69   :  { %v179_v47 = vmul.f32 0.6931472, %v372_v45  ;;  %v279_v49 = vsub.f32 %v259_v38, %v177_v41  ;;  %v291_v50 = vmul.f32 %v282_v36, %v278_v43 }
  0x6a   :  { %v374_v51 = vpop.eup %373 }
  0x6b   :  { %v181_v53 = vmul.f32 0.6931472, %v374_v51  ;;  %v280_v54 = vsub.f32 %v268_v42, %v179_v47  ;;  %v292_v55 = vmul.f32 %v284_v44, %v279_v49  ;;  %v295_v56 = vmul.f32 1.442695, %v291_v50 }
  0x6d   :  { %v281_v57 = vsub.f32 %v277_v48, %v181_v53  ;;  %v293_v58 = vmul.f32 %v285_v46, %v280_v54  ;;  %375 = vpow2.f32 %v295_v56  ;;  %v297_v59 = vmul.f32 1.442695, %v292_v55 }
  0x6f   :  { %v294_v60 = vmul.f32 %v286_v52, %v281_v57  ;;  %377 = vpow2.f32 %v297_v59  ;;  %v299_v61 = vmul.f32 1.442695, %v293_v58 }
  0x71   :  { %379 = vpow2.f32 %v299_v61  ;;  %v301_v62 = vmul.f32 1.442695, %v294_v60 }
  0x73   :  { %381 = vpow2.f32 %v301_v62 }
  0x7a   :  { %v376_v63 = vpop.eup %375 }
  0x7b   :  { %v303_v0 = vsub.f32 1.0, %v376_v63 }
  0x7c   :  { %v378_v7 = vpop.eup %377 }
  0x7d   :  { %v304_v8 = vsub.f32 1.0, %v378_v7  ;;  %v307_v9 = vmul.f32 %v303_v0, %v303_v0 }
  0x7e   :  { %v380_v12 = vpop.eup %379 }
  0x7f   :  { %v305_v1 = vsub.f32 1.0, %v380_v12  ;;  %v308_v2 = vmul.f32 %v304_v8, %v304_v8  ;;  %v312_v6 = vmul.f32 %v307_v9, %v291_v50 }
  0x80   :  { %v382_v3 = vpop.eup %381 }
  0x81   :  { %v306_v4 = vsub.f32 1.0, %v382_v3  ;;  %v309_v5 = vmul.f32 %v305_v1, %v305_v1  ;;  %v313_v10 = vmul.f32 %v308_v2, %v292_v55 }
  0x83   :  { %v310_v11 = vmul.f32 %v306_v4, %v306_v4  ;;  %v314_v13 = vmul.f32 %v309_v5, %v293_v58  ;;  %v320_v14 = vrot.slane %v313_v10, 7 }
  0x85   :  { %v315_v15 = vmul.f32 %v310_v11, %v294_v60  ;;  %v322_v16 = vsel %vm321_vm10, %v320_v14, %v312_v6  ;;  %v323_v17 = vrot.slane %v314_v13, 6 }
  0x87   :  { %v325_v18 = vsel %vm324_vm11, %v323_v17, %v322_v16  ;;  %v326_v19 = vrot.slane %v315_v15, 5 }
  0x89   :  { %v328_v20 = vsel %vm327_vm12, %v326_v19, %v325_v18 }
  0x8a   :  { %v331_v21 = vsel %vm330_vm13, %v328_v20, 0.0 }
  0x8b   :  { %332 = vadd.xlane.f32.xlu0 %v331_v21 }
 0x114   :  { %v333_v23 = vpop.xlane.xlu0 %332 }
 0x115   :  { %v334_v24 = vadd.f32 %v333_v23, %v311_v22 }
 0x117   :  { %336 = vst.msk [vmem:[%s530_s3] sm:$0xf] %vm67_vm0, %v334_v24 }
 0x118   :  { %341 = vsyncpa [#allocation3], 1 }
 0x119   :  { %342 = vsyncpa [#allocation5], 1 }

</bundles_post_ra>
